<compile_context>
chip_gen: v7x
topology: tpu7x:2x2x1
jax: 0.10.0
libtpu: 0.0.40
codegen_flags: <defaults>
</compile_context>

<pallas_src>
import numpy as np

import jax
import jax.numpy as jnp
from jax import lax
from jax.experimental import pallas as pl
from jax.experimental.pallas import tpu as pltpu


ENC_CHS = (8, 16, 32)          # encoder.out_channels
DEC_CHS = (16, 8)              # decoder['decoder_chs']
IN_CH = 4                      # inputs['img'] channels
IN_CH_PAD = 8                  # pad input channels 4 -> 8 (sublane aligned)
B_TILE = 2                     # images packed side-by-side on the lane axis

# (name, cin_actual, cin_padded, cout, level)   level: 0 = full res, 1 = /2, 2 = /4
LAYER_DEFS = (
    ("e1a",   IN_CH,                   IN_CH_PAD,               ENC_CHS[0], 0),
    ("e1b",   ENC_CHS[0],              ENC_CHS[0],              ENC_CHS[0], 0),
    ("e2a",   ENC_CHS[0],              ENC_CHS[0],              ENC_CHS[1], 1),
    ("e2b",   ENC_CHS[1],              ENC_CHS[1],              ENC_CHS[1], 1),
    ("e3a",   ENC_CHS[1],              ENC_CHS[1],              ENC_CHS[2], 2),
    ("e3b",   ENC_CHS[2],              ENC_CHS[2],              ENC_CHS[2], 2),
    ("d1a",   ENC_CHS[2] + ENC_CHS[1], ENC_CHS[2] + ENC_CHS[1], DEC_CHS[0], 1),
    ("d1b",   DEC_CHS[0],              DEC_CHS[0],              DEC_CHS[0], 1),
    ("d2a",   DEC_CHS[0] + ENC_CHS[0], DEC_CHS[0] + ENC_CHS[0], DEC_CHS[1], 0),
    ("d2b",   DEC_CHS[1],              DEC_CHS[1],              DEC_CHS[1], 0),
    ("head0", DEC_CHS[1],              DEC_CHS[1],              1,          0),
)
NUM_LAYERS = len(LAYER_DEFS)
COUT_MAX = max(d[3] for d in LAYER_DEFS)               # 32
KMAX = max(9 * d[2] for d in LAYER_DEFS)               # 432


# ----------------------------------------------------------------------------
# One-time roll-convention probe (tiny kernel, run OUTSIDE jit).  Guards
# against a silent tap-direction flip if pltpu.roll's sign convention ever
# differs from np.roll on this backend.
# ----------------------------------------------------------------------------
_ROLL_LIKE_NUMPY = None


def _probe_roll_convention():
    global _ROLL_LIKE_NUMPY
    if _ROLL_LIKE_NUMPY is not None:
        return _ROLL_LIKE_NUMPY

    def k(x_ref, o_ref):
        o_ref[...] = pltpu.roll(x_ref[...], 1, 1)

    x = jnp.arange(128, dtype=jnp.float32).reshape(1, 128)
    y = pl.pallas_call(k, out_shape=jax.ShapeDtypeStruct((1, 128), jnp.float32))(x)
    # np.roll(x, 1)[0] == 127  (rolled[i] = x[i - shift])
    _ROLL_LIKE_NUMPY = bool(jax.device_get(y)[0, 0] == 127.0)
    return _ROLL_LIKE_NUMPY


# ----------------------------------------------------------------------------
# Host-side (numpy) constants: border/validity masks, pool compaction and
# nearest-upsample 0/1 matrices.  A "level" is (h, w, s=h*w, n=b_tile*s,
# na=lane-padded n).  Valid lanes of image b live at [b*s, (b+1)*s).
# ----------------------------------------------------------------------------
def _level_masks(h, w, s, n, na):
    m = np.zeros((9, na), np.float32)
    for lane in range(n):
        si = lane % s
        hh, ww = si // w, si % w
        t = 0
        for dh in (-1, 0, 1):
            for dw in (-1, 0, 1):
                if 0 <= hh + dh < h and 0 <= ww + dw < w:
                    m[t, lane] = 1.0
                t += 1
    return m                          # pad lanes (>= n) stay 0 for every tap


def _pool_matrix(lvl_in, lvl_out, b_tile):
    h_i, w_i, s_i, _n_i, na_i = lvl_in
    h_o, w_o, s_o, _n_o, na_o = lvl_out
    p = np.zeros((na_i, na_o), np.float32)
    for b in range(b_tile):
        for ho in range(h_o):
            for wo in range(w_o):
                p[b * s_i + (2 * ho) * w_i + (2 * wo), b * s_o + ho * w_o + wo] = 1.0
    return p


def _upsample_matrix(lvl_coarse, lvl_fine, b_tile):
    h_f, w_f, s_f, _n_f, na_f = lvl_fine
    _h_c, w_c, s_c, _n_c, na_c = lvl_coarse
    u = np.zeros((na_c, na_f), np.float32)
    for b in range(b_tile):
        for hf in range(h_f):
            for wf in range(w_f):
                u[b * s_c + (hf // 2) * w_c + (wf // 2), b * s_f + hf * w_f + wf] = 1.0
    return u


# ----------------------------------------------------------------------------
# Parameter init (HWIO f32, deterministic) + packing into two flat slabs.
# ----------------------------------------------------------------------------
def init_unet_params(key):
    params = {}
    keys = jax.random.split(key, NUM_LAYERS)
    for li, (name, cin, _cin_pad, cout, _lvl) in enumerate(LAYER_DEFS):
        kw, kb = jax.random.split(keys[li])
        scale = np.sqrt(2.0 / (9 * cin)).astype(np.float32)
        w = jax.random.normal(kw, (3, 3, cin, cout), jnp.float32) * scale   # HWIO
        b = 0.01 * jax.random.normal(kb, (cout,), jnp.float32)
        params[name] = {"w": w, "b": b}
    return params


def _pack_params(params):
    """Pack all conv weights/biases into (11, 32, 432) bf16 and (11, 32, 1) f32."""
    ws, bs = [], []
    for (name, cin, cin_pad, cout, _lvl) in LAYER_DEFS:
        w = params[name]["w"].astype(jnp.float32)            # (3,3,cin,cout)
        b = params[name]["b"].astype(jnp.float32)            # (cout,)
        if cin_pad != cin:                                    # zero-weight padded channels
            w = jnp.pad(w, ((0, 0), (0, 0), (0, cin_pad - cin), (0, 0)))
        # im2col column order: col = t*cin_pad + ci with t = kh*3 + kw
        wt = jnp.transpose(w, (3, 0, 1, 2)).reshape(cout, 9 * cin_pad)
        wt = jnp.pad(wt, ((0, COUT_MAX - cout), (0, KMAX - 9 * cin_pad)))
        ws.append(wt)
        bs.append(jnp.pad(b, (0, COUT_MAX - cout)).reshape(COUT_MAX, 1))
    wbuf = jnp.stack(ws, axis=0).astype(jnp.bfloat16)         # (11, 32, 432)
    bbuf = jnp.stack(bs, axis=0)                              # (11, 32, 1) f32
    return wbuf, bbuf


# ----------------------------------------------------------------------------
# The fused UNet kernel (built as a closure over static geometry).
# ----------------------------------------------------------------------------
def _make_kernel(levels, mask_off, roll_like_numpy):
    lvl_w = [lv[1] for lv in levels]       # per-image row width at each level
    lvl_na = [lv[4] for lv in levels]      # lane extent (padded) at each level

    def _roll_lanes(a, off):
        """rolled[:, i] = a[:, (i + off) mod n]  -- XLU lane rotation."""
        n = a.shape[-1]
        if off % n == 0:
            return a
        shift = (-off) % n if roll_like_numpy else off % n
        return pltpu.roll(a, shift, 1)

    def kernel(x_ref, w_ref, b_ref, m_ref, p0_ref, p1_ref, u2_ref, u1_ref, o_ref):

        def conv(a, li, cout, level, relu=True):
            """3x3 'same' conv, channels-major (Cin, N) -> (Cout, N)."""
            cin = a.shape[0]
            n = lvl_na[level]
            w_im = lvl_w[level]
            lo = mask_off[level]
            masks = m_ref[:, lo:lo + n]                       # (9, N) f32 border masks
            taps = []
            t = 0
            for dh in (-1, 0, 1):
                for dw in (-1, 0, 1):
                    tap = _roll_lanes(a, dh * w_im + dw)      # XLU roll (taps)
                    taps.append(tap * masks[t:t + 1, :])      # VPU mask ('same' padding)
                    t += 1
            patches = jnp.concatenate(taps, axis=0).astype(jnp.bfloat16)   # (9*Cin, N)
            w = w_ref[li, 0:cout, 0:9 * cin]                  # (Cout, 9*Cin) bf16
            acc = jnp.dot(w, patches,                         # single im2col MXU matmul
                          preferred_element_type=jnp.float32)
            acc = acc + b_ref[li, 0:cout, :]                  # bias/ReLU stay in f32
            return jnp.maximum(acc, 0.0) if relu else acc

        def maxpool(a, level_in, p_ref):
            """2x2/2 max-pool: 3 rolls + max on VPU, one bf16 compaction matmul."""
            w_im = lvl_w[level_in]
            m = a
            for off in (1, w_im, w_im + 1):
                m = jnp.maximum(m, _roll_lanes(a, off))
            return jnp.dot(m.astype(jnp.bfloat16), p_ref[...],
                           preferred_element_type=jnp.float32)

        def upsample(a, u_ref):
            """Nearest 2x upsample: one bf16 replication matmul."""
            return jnp.dot(a.astype(jnp.bfloat16), u_ref[...],
                           preferred_element_type=jnp.float32)

        x = x_ref[0]                                          # (IN_CH_PAD, N0) f32

        # -------- encoder --------
        f0 = conv(x, 0, ENC_CHS[0], 0)
        f0 = conv(f0, 1, ENC_CHS[0], 0)                       # (8,  N0)
        f1 = maxpool(f0, 0, p0_ref)                           # (8,  N1)
        f1 = conv(f1, 2, ENC_CHS[1], 1)
        f1 = conv(f1, 3, ENC_CHS[1], 1)                       # (16, N1)
        f2 = maxpool(f1, 1, p1_ref)                           # (16, N2)
        f2 = conv(f2, 4, ENC_CHS[2], 2)
        f2 = conv(f2, 5, ENC_CHS[2], 2)                       # (32, N2)

        # -------- decoder: center = f2, skips = [f1, f0] (VMEM-only concat) --------
        d = upsample(f2, u2_ref)                              # (32, N1)
        d = jnp.concatenate([d, f1], axis=0)                  # (48, N1)
        d = conv(d, 6, DEC_CHS[0], 1)
        d = conv(d, 7, DEC_CHS[0], 1)                         # (16, N1)
        d = upsample(d, u1_ref)                               # (16, N0)
        d = jnp.concatenate([d, f0], axis=0)                  # (24, N0)
        d = conv(d, 8, DEC_CHS[1], 0)
        d = conv(d, 9, DEC_CHS[1], 0)                         # (8,  N0)

        # -------- head0: 3x3 conv -> 1 channel logits (lane-dense row) --------
        out = conv(d, 10, 1, 0, relu=False)                   # (1, N0)
        o_ref[0] = out

    return kernel


# ----------------------------------------------------------------------------
# Forward pass (mirrors UNet.forward); PyTorch NCHW in, NCHW out.
# ----------------------------------------------------------------------------
def unet_forward(params, inputs, *, b_tile=B_TILE):
    img = inputs["img"]                                       # (B, 4, H, W)
    B, C, H, W = img.shape
    assert C == IN_CH and H % 4 == 0 and W % 4 == 0
    assert B % b_tile == 0
    n_tiles = B // b_tile

    # ---- static per-level geometry: (h, w, s, n, na) ----
    levels, mask_off = [], []
    off = 0
    for k in range(3):
        h, w = H >> k, W >> k
        s = h * w
        n = b_tile * s
        na = ((max(n, 128) + 127) // 128) * 128               # lane-pad narrow levels
        levels.append((h, w, s, n, na))
        mask_off.append(off)
        off += na
    h0, w0, s0, n0, na0 = levels[0]

    # ---- host-built 0/1 selection constants (small; bf16 on the MXU) ----
    # TODO(synk): at large resolutions replace the (N, N/4)/(N/4, N) pool &
    # upsample matrices with row-tiled halo processing (they grow O(S^2)).
    masks = np.concatenate([_level_masks(*lv) for lv in levels], axis=1)   # (9, sum na)
    p0 = _pool_matrix(levels[0], levels[1], b_tile)
    p1 = _pool_matrix(levels[1], levels[2], b_tile)
    u2 = _upsample_matrix(levels[2], levels[1], b_tile)
    u1 = _upsample_matrix(levels[1], levels[0], b_tile)

    wbuf, bbuf = _pack_params(params)

    # ---- input: NCHW -> (n_tiles, IN_CH_PAD, b_tile*H*W), images side by side on lanes ----
    x = img.reshape(n_tiles, b_tile, C, s0)
    x = jnp.concatenate(
        [x, jnp.zeros((n_tiles, b_tile, IN_CH_PAD - C, s0), img.dtype)], axis=2)
    x = jnp.transpose(x, (0, 2, 1, 3)).reshape(n_tiles, IN_CH_PAD, n0)
    if na0 != n0:
        x = jnp.pad(x, ((0, 0), (0, 0), (0, na0 - n0)))

    consts = [
        wbuf,                                                 # (11, 32, 432) bf16
        bbuf,                                                 # (11, 32, 1)   f32
        jnp.asarray(masks, jnp.float32),                      # (9, sum na)   f32
        jnp.asarray(p0, jnp.bfloat16), jnp.asarray(p1, jnp.bfloat16),
        jnp.asarray(u2, jnp.bfloat16), jnp.asarray(u1, jnp.bfloat16),
    ]

    def _const_spec(a):
        nd = a.ndim
        return pl.BlockSpec(a.shape, lambda i, _nd=nd: (0,) * _nd)

    roll_like_numpy = _ROLL_LIKE_NUMPY if _ROLL_LIKE_NUMPY is not None else True
    kernel = _make_kernel(levels, mask_off, roll_like_numpy)

    out = pl.pallas_call(
        kernel,
        out_shape=jax.ShapeDtypeStruct((n_tiles, 1, na0), jnp.float32),
        grid_spec=pltpu.PrefetchScalarGridSpec(
            num_scalar_prefetch=0,
            grid=(n_tiles,),                                  # one batch tile per step
            in_specs=[pl.BlockSpec((1, IN_CH_PAD, na0), lambda i: (i, 0, 0))]
                     + [_const_spec(a) for a in consts],
            out_specs=pl.BlockSpec((1, 1, na0), lambda i: (i, 0, 0)),
        ),
        compiler_params=pltpu.CompilerParams(
            dimension_semantics=("parallel",)),               # megacore-shard batch tiles
    )(x, *consts)

    out = out[:, :, :n0].reshape(n_tiles, 1, b_tile, s0)
    out = jnp.transpose(out, (0, 2, 1, 3)).reshape(B, 1, H, W)
    return out                                                # PyTorch NCHW output


# ----------------------------------------------------------------------------
# Pure-JAX f32 reference (mirrors the PyTorch module) for a tolerance check.
# ----------------------------------------------------------------------------
def unet_reference(params, img):
    def conv(x, name, relu=True):
        w, b = params[name]["w"], params[name]["b"]
        y = lax.conv_general_dilated(x, w, (1, 1), "SAME",
                                     dimension_numbers=("NCHW", "HWIO", "NCHW"),
                                     precision=lax.Precision.HIGHEST)
        y = y + b.reshape(1, -1, 1, 1)
        return jnp.maximum(y, 0.0) if relu else y

    def pool(x):
        return lax.reduce_window(x, -jnp.inf, lax.max,
                                 (1, 1, 2, 2), (1, 1, 2, 2), "VALID")

    def up(x):
        return jnp.repeat(jnp.repeat(x, 2, axis=2), 2, axis=3)

    f0 = conv(conv(img, "e1a"), "e1b")
    f1 = conv(conv(pool(f0), "e2a"), "e2b")
    f2 = conv(conv(pool(f1), "e3a"), "e3b")
    d = conv(conv(jnp.concatenate([up(f2), f1], axis=1), "d1a"), "d1b")
    d = conv(conv(jnp.concatenate([up(d), f0], axis=1), "d2a"), "d2b")
    return conv(d, "head0", relu=False)


if __name__ == "__main__":
    key = jax.random.PRNGKey(0)
    pkey, xkey = jax.random.split(key)
    params = init_unet_params(pkey)

    B, C, H, W = 2, 4, 16, 16
    img = jax.random.normal(xkey, (B, C, H, W), jnp.float32)
    inputs = {"img": img}

    _probe_roll_convention()                 # one-time calibration, outside jit

    fwd = jax.jit(unet_forward)
    out = jax.block_until_ready(fwd(params, inputs))

    assert out.shape == (B, 1, H, W), out.shape
    assert bool(jnp.all(jnp.isfinite(out)))

    # Tolerance check vs a pure-JAX f32 reference (kernel uses bf16 MXU inputs).
    ref = jax.block_until_ready(unet_reference(params, img))
    err = float(jnp.max(jnp.abs(out - ref)))
    scale = float(jnp.max(jnp.abs(ref)))
    assert err <= 0.1 * max(scale, 1.0), (err, scale)

    print("KERNEL_OK")
</pallas_src>

<mosaic_0001>
module attributes {stable_mosaic.version = 11 : i64} {
  func.func @k(%arg0: memref<1x128xf32, #tpu.memory_space<vmem>>, %arg1: memref<1x128xf32, #tpu.memory_space<vmem>>) attributes {dimension_semantics = [], scalar_prefetch = 0 : i64, scratch_operands = 0 : i64, tpu.core_type = #tpu.core_type<tc>} {
    %c0 = arith.constant 0 : index
    %c0_0 = arith.constant 0 : index
    %0 = vector.load %arg0[%c0, %c0_0] : memref<1x128xf32, #tpu.memory_space<vmem>>, vector<1x128xf32>
    %c1_i32 = arith.constant 1 : i32
    %1 = tpu.dynamic_rotate %0 by %c1_i32 dim 1 : vector<1x128xf32>, i32 -> vector<1x128xf32>
    %c0_1 = arith.constant 0 : index
    %c0_2 = arith.constant 0 : index
    %2 = vector.load %arg1[%c0_1, %c0_2] : memref<1x128xf32, #tpu.memory_space<vmem>>, vector<1x128xf32>
    tpu.vector_store %arg1[%c0_1, %c0_2], %1 {strides = array<i32>} : memref<1x128xf32, #tpu.memory_space<vmem>>, vector<1x128xf32>,
    return
  }
}

</mosaic_0001>

<bundles_post_ra>
// kernel: tpu_custom_call.1
= control target key start
LH: loop header
LB: loop body
LE: loop exit
PB: predicated region body
PF: predicated region fallthrough
CT: control target
= control target key end

     0   :  { %6 = vsyncpa [#allocation3], 0  ;;  %s128_s0 = inlined_call_operand.hbm [shape: f32[1,128], index: 0, kind: input, shape index: {}]   ;;  %s129_s1 = inlined_call_operand.hbm [shape: f32[1,128], index: 1, kind: output, shape index: {}]  }
   0x1   :  { %7 = vsyncpa [#allocation4], 0  ;;  %s91_s6 = smov [#allocation2]   ;;  %s43_s10 = scalar_lea.hbm %s128_s0, 16 }
   0x2   :  { %s14_s7 = sshll.u32 %s91_s6, 4  ;;  %p44_p0 = scmp.ne.s32.totalorder %s128_s0, %s43_s10  ;;  %s15_s7 = int_to_ptr.vmem [resolvable:$true] %s14_s7 }
   0x3   :  { %p47_p1 = scmp.lt.u32.totalorder %s43_s10, %s128_s0 }
   0x5   :  { %p49_p2 = pnand %p47_p1, %p44_p0 }
   0x7   :  { %52 = shalt.err (!%p49_p2)
}
   0x8   :  { %s53_s15 = scalar_lea.vmem %s15_s7, 16  ;;  %s57_s16 = scalar_lea.vmem %s15_s7, 32 }
   0x9   :  { %p54_p3 = scmp.ne.s32.totalorder %s15_s7, %s53_s15  ;;  %p58_p4 = scmp.lt.s32.totalorder %s15_s7, %s15_s7 }
   0xa   :  { %p59_p5 = scmp.lt.s32.totalorder %s57_s16, %s53_s15 }
   0xc   :  { %p60_p6 = por %p59_p5, %p58_p4 }
   0xe   :  { %p61_p7 = pnand %p60_p6, %p54_p3 }
  0x10   :  { %64 = shalt.err (!%p61_p7)
}
  0x11   :  { %17 = dma.hbm_to_vmem [thread:$0]  %s128_s0, 16, %s15_s7, [#allocation3]  }
  0x12   :  { %87 = dma.done.wait [#allocation3], 16  }
  0x13   :  { %88 = vsyncadd [#allocation3], 4294967280  ;;  %v21_v0 = vld [vmem:[#allocation2] sm:$0x1]  ;;  %s92_s19 = smov 1   ;;  %s93_s20 = smov [#allocation5]  }
  0x14   :  { %22 = vrot.lane.b32.xlu0 %v21_v0, %s92_s19  ;;  %s31_s21 = sshll.u32 %s93_s20, 4  ;;  %s32_s21 = int_to_ptr.vmem [resolvable:$true] %s31_s21 }
  0x15   :  { %s65_s22 = scalar_lea.vmem %s32_s21, 16  ;;  %s69_s23 = scalar_lea.vmem %s32_s21, 32 }
  0x16   :  { %p66_p8 = scmp.ne.s32.totalorder %s32_s21, %s65_s22  ;;  %p70_p9 = scmp.lt.s32.totalorder %s32_s21, %s32_s21 }
  0x17   :  { %p71_p10 = scmp.lt.s32.totalorder %s69_s23, %s65_s22 }
  0x19   :  { %p72_p11 = por %p71_p10, %p70_p9 }
  0x1b   :  { %p73_p12 = pnand %p72_p11, %p66_p8 }
  0x86   :  { %v23_v1 = vpop.permute.xlu0 %22 }
  0x87   :  { %24 = vst [vmem:[#allocation5] sm:$0x1] %v23_v1 }
  0x88   :  { %76 = shalt.err (!%p73_p12)
}
  0x89   :  { %s77_s25 = scalar_lea.hbm %s129_s1, 16 }
  0x8a   :  { %p78_p13 = scmp.ne.s32.totalorder %s129_s1, %s77_s25  ;;  %p81_p0 = scmp.lt.u32.totalorder %s77_s25, %s129_s1 }
  0x8c   :  { %p83_p1 = pnand %p81_p0, %p78_p13 }
  0x8e   :  { %86 = shalt.err (!%p83_p1)
}
  0x8f   :  { %34 = dma.vmem_to_hbm [thread:$0]  %s32_s21, 16, %s129_s1, [#allocation4]  }
  0x90   :  { %89 = dma.done.wait [#allocation4], 16  }
  0x91   :  { %90 = vsyncadd [#allocation4], 4294967280 }
  0x92   :  { %38 = vsyncpa [#allocation3], 1 }
  0x93   :  { %39 = vsyncpa [#allocation4], 1 }

</bundles_post_ra>
